<compile_context>
chip_gen: v6e
topology: v6e:2x2x1
jax: 0.10.0
libtpu: 0.0.40
codegen_flags: <defaults>
</compile_context>

<pallas_src>
import functools
import itertools

import numpy as np
import jax
import jax.numpy as jnp
from jax.experimental import pallas as pl
from jax.experimental.pallas import tpu as pltpu

# ---------------- configs (mirroring the PyTorch module) ----------------
ENC_N_LEVELS = 16          # encoding_config['n_levels']
ENC_FEAT = 2               # encoding_config['n_features_per_level']
ENC_LOG2_T = 19            # encoding_config['log2_hashmap_size']
ENC_BASE_RES = 16          # encoding_config['base_resolution']
ENC_SCALE = 2.0            # encoding_config['per_level_scale']
ENC_DIM = ENC_N_LEVELS * ENC_FEAT   # 32

IMG_HIDDEN = 256           # network_config: CutLassMLP, ReLU, 1 hidden layer
MOT_HIDDEN = 64            # mot_network_config: FullyFusedMLP, Tanh, 1 hidden
OUT_PAD = 8                # 2 real outputs padded to 8 sublanes


def _round_up(x, m):
    return ((x + m - 1) // m) * m


@functools.lru_cache(maxsize=None)
def _vmem_limit_bytes():
    """Generation-aware scoped-VMEM budget (~60% of physical per-TC VMEM)."""
    try:
        cap = int(pltpu.get_tpu_info().vmem_capacity_bytes)
    except Exception:
        cap = 128 * 1024 * 1024
    return max(32 * 1024 * 1024, int(cap * 0.6))


# ---------------- Pallas kernels ----------------
def _mlp_t_kernel(x_ref, w1_ref, w2_ref, o_ref, *, act, out_tanh):
    # x_ref: (d_in, tile_n) bf16, w1_ref: (d_hid, d_in) bf16,
    # w2_ref: (8, d_hid) bf16 (rows 2..7 zero), o_ref: (8, tile_n) f32.
    h = jnp.dot(w1_ref[...], x_ref[...],
                preferred_element_type=jnp.float32)          # (d_hid, tile_n)
    if act == "relu":
        h = jnp.maximum(h, 0.0)
    else:  # "tanh"
        h = jnp.tanh(h)
    out = jnp.dot(w2_ref[...], h.astype(w2_ref.dtype),
                  preferred_element_type=jnp.float32)        # (8, tile_n)
    if out_tanh:
        # fused output tanh (motion INR); tanh(0)=0 keeps padded rows zero
        out = jnp.tanh(out)
    o_ref[...] = out


def mlp_forward_t(x_t, w1_t, w2_t_pad, *, act, d_out, out_tanh=False,
                  tile_n=4096):
    """Transposed tcnn-style 2-matrix MLP (no biases).
    x_t: (d_in, N) bf16 features, w1_t: (d_hid, d_in) bf16,
    w2_t_pad: (8, d_hid) bf16 with rows >= d_out zero.
    Returns (d_out, N) float32 -- optionally with fused output tanh."""
    d_in, n = x_t.shape
    d_hid = w1_t.shape[0]

    tile_n = min(tile_n, _round_up(n, 128))
    n_pad = _round_up(n, tile_n)
    if n_pad != n:
        x_t = jnp.pad(x_t, ((0, 0), (0, n_pad - n)))

    flops = 2 * n_pad * (d_in * d_hid + d_hid * OUT_PAD)
    transc = (n_pad * d_hid if act == "tanh" else 0) \
        + (OUT_PAD * n_pad if out_tanh else 0)
    bytes_acc = (n_pad * d_in * 2 + d_hid * d_in * 2
                 + OUT_PAD * d_hid * 2 + OUT_PAD * n_pad * 4)

    out = pl.pallas_call(
        functools.partial(_mlp_t_kernel, act=act, out_tanh=out_tanh),
        out_shape=jax.ShapeDtypeStruct((OUT_PAD, n_pad), jnp.float32),
        grid_spec=pltpu.PrefetchScalarGridSpec(
            num_scalar_prefetch=0,
            grid=(n_pad // tile_n,),
            in_specs=[
                pl.BlockSpec((d_in, tile_n), lambda i: (0, i)),
                pl.BlockSpec((d_hid, d_in), lambda i: (0, 0)),
                pl.BlockSpec((OUT_PAD, d_hid), lambda i: (0, 0)),
            ],
            out_specs=pl.BlockSpec((OUT_PAD, tile_n), lambda i: (0, i)),
        ),
        compiler_params=pltpu.CompilerParams(
            dimension_semantics=("parallel",),
            vmem_limit_bytes=_vmem_limit_bytes()),
        cost_estimate=pl.CostEstimate(
            flops=int(flops), transcendentals=int(transc),
            bytes_accessed=int(bytes_acc)),
    )(x_t, w1_t, w2_t_pad)
    return out[:d_out, :n]


def _kspace_kernel(fp_re_ref, fp_im_ref, fm_re_ref, fm_im_ref, m_ref,
                   o_re_ref, o_im_ref):
    # kspace = fp*(1-sum_m m) + sum_m m*fm  ==  fp + sum_m m*(fm - fp)
    @pl.when(pl.program_id(1) == 0)
    def _():
        o_re_ref[...] = fp_re_ref[...]
        o_im_ref[...] = fp_im_ref[...]
    m = m_ref[0].astype(jnp.float32)                       # (tile_h, W)
    o_re_ref[...] += m * (fm_re_ref[0] - fp_re_ref[...])
    o_im_ref[...] += m * (fm_im_ref[0] - fp_im_ref[...])


def _pick_tile_h(H, W, vmem_budget):
    """Largest multiple of 16 dividing H that fits the VMEM budget, preferring
    >=2 row tiles (v7x has 2 TensorCores); falls back to full H."""
    # per tile-row bytes: double-buffered inputs (4 f32 planes + bf16 mask)
    # + double-buffered f32 output planes.
    per_row = (2 * (4 * 4 + 2) + 2 * 2 * 4) * W
    max_rows = max(16, vmem_budget // max(per_row, 1))
    cands = [t for t in range(16, H + 1, 16) if H % t == 0 and t <= max_rows]
    if not cands:
        return H
    multi = [t for t in cands if H // t >= 2]
    return max(multi) if multi else max(cands)


def kspace_combine(f_prior, f_mot, masks_bf16):
    """kspace = F(prior)*(1-masks.sum(0)) + (F(motion)*masks).sum(0) (complex).
    Row-tiled over H ('parallel'); movement reduction on a trailing
    'arbitrary' grid axis so per-step VMEM is independent of M."""
    M, H, W = masks_bf16.shape
    tile_h = _pick_tile_h(H, W, _vmem_limit_bytes() // 2)
    grid_h = H // tile_h

    flops = H * W * (6 * M + 2)
    bytes_acc = (2 + 2) * H * W * 4 + M * H * W * (2 * 4 + 2)

    out_re, out_im = pl.pallas_call(
        _kspace_kernel,
        out_shape=(jax.ShapeDtypeStruct((H, W), jnp.float32),
                   jax.ShapeDtypeStruct((H, W), jnp.float32)),
        grid_spec=pltpu.PrefetchScalarGridSpec(
            num_scalar_prefetch=0,
            grid=(grid_h, M),
            in_specs=[
                pl.BlockSpec((tile_h, W), lambda i, mi: (i, 0)),
                pl.BlockSpec((tile_h, W), lambda i, mi: (i, 0)),
                pl.BlockSpec((1, tile_h, W), lambda i, mi: (mi, i, 0)),
                pl.BlockSpec((1, tile_h, W), lambda i, mi: (mi, i, 0)),
                pl.BlockSpec((1, tile_h, W), lambda i, mi: (mi, i, 0)),
            ],
            out_specs=[pl.BlockSpec((tile_h, W), lambda i, mi: (i, 0)),
                       pl.BlockSpec((tile_h, W), lambda i, mi: (i, 0))],
        ),
        compiler_params=pltpu.CompilerParams(
            dimension_semantics=("parallel", "arbitrary"),
            vmem_limit_bytes=_vmem_limit_bytes()),
        cost_estimate=pl.CostEstimate(
            flops=int(flops), transcendentals=0,
            bytes_accessed=int(bytes_acc)),
    )(jnp.real(f_prior).astype(jnp.float32),
      jnp.imag(f_prior).astype(jnp.float32),
      jnp.real(f_mot).astype(jnp.float32),
      jnp.imag(f_mot).astype(jnp.float32),
      masks_bf16)
    return out_re + 1j * out_im


# ---------------- plain-JAX glue ----------------
_PRIMES = np.array([1, 2654435761, 805459861], dtype=np.uint32)


def hash_encode(coords, table, out_dtype=jnp.bfloat16):
    """Instant-NGP style multiresolution hash-grid encoding, accumulated
    corner-by-corner so the (C, L, N, F) intermediate is never materialized.
    coords: (N, D) in [-1, 1] -> transposed features (ENC_DIM, N) in out_dtype.
    # TODO(synk): tcnn's dense-grid fallback for coarse levels is not
    # reproduced (every level hashed); a Pallas manual-DMA gather fused with
    # the MLP input would be the next step -- the XLA gather still dominates.
    """
    n, d = coords.shape
    L, T, Fd = table.shape
    x01 = (coords.astype(jnp.float32) + 1.0) * 0.5

    res = np.floor(ENC_BASE_RES * (ENC_SCALE ** np.arange(L))).astype(np.float32)
    pos = x01[None, :, :] * res[:, None, None]                   # (L, N, D)
    pos0 = jnp.floor(pos)
    frac = pos - pos0
    pos0i = pos0.astype(jnp.int32)

    flat_table = table.reshape(L * T, Fd)
    lvl_off = (np.arange(L, dtype=np.int32) * T)[:, None]        # (L, 1)

    acc = jnp.zeros((L, n, Fd), jnp.float32)
    for corner in itertools.product([0, 1], repeat=d):
        coff = np.asarray(corner, dtype=np.int32)
        cp = (pos0i + coff).astype(jnp.uint32)                    # (L, N, D)
        h = cp[..., 0] * jnp.uint32(_PRIMES[0])
        for dd in range(1, d):
            h = h ^ (cp[..., dd] * jnp.uint32(_PRIMES[dd]))
        idx = (h % jnp.uint32(T)).astype(jnp.int32) + lvl_off     # (L, N)
        vals = jnp.take(flat_table, idx, axis=0)                  # (L, N, F)
        csel = coff.astype(np.float32)[None, None, :]
        w = jnp.prod(jnp.where(csel > 0.5, frac, 1.0 - frac), axis=-1)  # (L, N)
        acc = acc + vals * w[..., None]

    # transposed feature layout (L*F, N): level-major, feature-minor
    feat_t = jnp.transpose(acc, (0, 2, 1)).reshape(L * Fd, n)
    return feat_t.astype(out_dtype)


def grid_sample_bilinear_planes(planes, gx, gy):
    """torch F.grid_sample(mode='bilinear', align_corners=False,
    padding_mode='zeros') of one or more single (H, W) source planes at the
    same batched grid. gx/gy: (M, Ho, Wo) in [-1, 1] (x=width, y=height).
    Returns a list of (M, Ho, Wo) arrays — no M-fold source broadcast."""
    H, W = planes[0].shape
    ix = ((gx + 1.0) * W - 1.0) * 0.5
    iy = ((gy + 1.0) * H - 1.0) * 0.5
    x0 = jnp.floor(ix)
    y0 = jnp.floor(iy)
    wx1 = ix - x0
    wx0 = 1.0 - wx1
    wy1 = iy - y0
    wy0 = 1.0 - wy1

    def tap(yc, xc, w):
        valid = (xc >= 0) & (xc <= W - 1) & (yc >= 0) & (yc <= H - 1)
        xi = jnp.clip(xc, 0, W - 1).astype(jnp.int32)
        yi = jnp.clip(yc, 0, H - 1).astype(jnp.int32)
        return [jnp.where(valid, p[yi, xi], 0.0) * w for p in planes]

    t00 = tap(y0, x0, wy0 * wx0)
    t01 = tap(y0, x0 + 1.0, wy0 * wx1)
    t10 = tap(y0 + 1.0, x0, wy1 * wx0)
    t11 = tap(y0 + 1.0, x0 + 1.0, wy1 * wx1)
    return [a + b + c + d for a, b, c, d in zip(t00, t01, t10, t11)]


def centered_fft2(x):
    # TODO(synk): FFT has no clean Pallas equivalent; done with jnp.fft (XLA).
    return jnp.fft.fftshift(
        jnp.fft.fft2(jnp.fft.ifftshift(x, axes=(-2, -1)),
                     axes=(-2, -1), norm="ortho"),
        axes=(-2, -1))


def make_grids(sizes):
    lins = [jnp.linspace(-1.0, 1.0, s) for s in sizes]
    mesh = jnp.meshgrid(*lins, indexing="ij")
    return jnp.stack(mesh, axis=-1).reshape(-1, len(sizes))


def affine_identity_grid(H, W):
    # F.affine_grid(eye(2,3), (1,1,H,W), align_corners=True) -> (1, H, W, 2)
    xs = jnp.linspace(-1.0, 1.0, W)
    ys = jnp.linspace(-1.0, 1.0, H)
    gx, gy = jnp.meshgrid(xs, ys, indexing="xy")       # (H, W) each
    return jnp.stack([gx, gy], axis=-1)[None]          # (1, H, W, 2)


def _pad_w2_t(w2):
    """(d_hid, d_out) -> transposed bf16 (8, d_hid) with rows >= d_out zero."""
    d_hid, d_out = w2.shape
    return jnp.pad(w2.T, ((0, OUT_PAD - d_out), (0, 0))).astype(jnp.bfloat16)


# ---------------- IMMoCo model ----------------
class IMMoCoPallas:
    def __init__(self, masks, key):
        self.masks = masks.astype(jnp.float32)
        self.masks_bf16 = masks.astype(jnp.bfloat16)     # 0/1 exact in bf16
        self.num_movements, self.x, self.num_lines = masks.shape
        k = jax.random.split(key, 6)
        T = 2 ** ENC_LOG2_T
        init = 1e-4
        self.img_table = jax.random.uniform(
            k[0], (ENC_N_LEVELS, T, ENC_FEAT), jnp.float32, -init, init)
        self.mot_table = jax.random.uniform(
            k[1], (ENC_N_LEVELS, T, ENC_FEAT), jnp.float32, -init, init)
        img_w1 = jax.random.normal(k[2], (ENC_DIM, IMG_HIDDEN), jnp.float32) / np.sqrt(ENC_DIM)
        img_w2 = jax.random.normal(k[3], (IMG_HIDDEN, 2), jnp.float32) / np.sqrt(IMG_HIDDEN)
        mot_w1 = jax.random.normal(k[4], (ENC_DIM, MOT_HIDDEN), jnp.float32) / np.sqrt(ENC_DIM)
        mot_w2 = jax.random.normal(k[5], (MOT_HIDDEN, 2), jnp.float32) / np.sqrt(MOT_HIDDEN)
        # hoisted per-call weight prep: transposed bf16 weights, padded w2
        self.img_w1_t = jnp.asarray(img_w1.T, jnp.bfloat16)    # (256, 32)
        self.img_w2_t = _pad_w2_t(img_w2)                      # (8, 256)
        self.mot_w1_t = jnp.asarray(mot_w1.T, jnp.bfloat16)    # (64, 32)
        self.mot_w2_t = _pad_w2_t(mot_w2)                      # (8, 64)
        self.identity_grid = affine_identity_grid(self.x, self.num_lines)
        self.input_grid = make_grids((self.num_movements, self.x, self.num_lines))

    def forward(self):
        M, H, W = self.num_movements, self.x, self.num_lines

        # image INR: hash-encode identity-grid coords (transposed bf16 slab),
        # MLP (ReLU hidden) in Pallas with lane-dense transposed output.
        img_feat_t = hash_encode(self.identity_grid.reshape(-1, 2),
                                 self.img_table)                    # (32, H*W)
        img_out = mlp_forward_t(img_feat_t, self.img_w1_t, self.img_w2_t,
                                act="relu", d_out=2)                # (2, H*W)
        img_re = img_out[0].reshape(H, W)
        img_im = img_out[1].reshape(H, W)
        image_prior = img_re + 1j * img_im                          # (H, W) c64

        # motion INR: hash-encode 3D grid, MLP (Tanh hidden) in Pallas with
        # the output tanh fused into the kernel epilogue, then + identity grid.
        mot_feat_t = hash_encode(self.input_grid, self.mot_table)   # (32, M*H*W)
        mot_out = mlp_forward_t(mot_feat_t, self.mot_w1_t, self.mot_w2_t,
                                act="tanh", d_out=2, out_tanh=True)  # (2, M*H*W)
        gx = mot_out[0].reshape(M, H, W) + self.identity_grid[0, ..., 0][None]
        gy = mot_out[1].reshape(M, H, W) + self.identity_grid[0, ..., 1][None]

        # warp the single prior image's real/imag planes (no M-fold broadcast)
        warped_re, warped_im = grid_sample_bilinear_planes(
            (img_re, img_im), gx, gy)                               # (M, H, W)
        motion_images = warped_re + 1j * warped_im

        # k-space consistency combine (Pallas: row tiles x movement reduction)
        f_prior = centered_fft2(image_prior)
        f_mot = centered_fft2(motion_images)
        kspace_out = kspace_combine(f_prior, f_mot, self.masks_bf16)
        return kspace_out, image_prior


if __name__ == "__main__":
    key = jax.random.PRNGKey(0)
    M, X, L = 2, 16, 16   # num_movements, x, num_lines

    # deterministic binary line masks; some lines left unmasked so both
    # branches of the k-space combine contribute
    masks_np = np.zeros((M, X, L), dtype=np.float32)
    for m in range(M):
        for l in range(L):
            if l % (M + 1) == m:
                masks_np[m, :, l] = 1.0
    masks = jnp.asarray(masks_np)

    model = IMMoCoPallas(masks, key)
    kspace_out, image_prior = model.forward()
    jax.block_until_ready((kspace_out, image_prior))

    assert kspace_out.shape == (X, L) and kspace_out.dtype == jnp.complex64
    assert image_prior.shape == (X, L) and image_prior.dtype == jnp.complex64
    assert bool(jnp.all(jnp.isfinite(jnp.abs(kspace_out))))
    assert bool(jnp.all(jnp.isfinite(jnp.abs(image_prior))))
    print("KERNEL_OK")
</pallas_src>

<mosaic_0001>
module attributes {stable_mosaic.version = 11 : i64} {
  func.func @_mlp_t_kernel(%arg0: i32, %arg1: memref<32x256xbf16, #tpu.memory_space<vmem>>, %arg2: memref<256x32xbf16, #tpu.memory_space<vmem>>, %arg3: memref<8x256xbf16, #tpu.memory_space<vmem>>, %arg4: memref<8x256xf32, #tpu.memory_space<vmem>>) attributes {dimension_semantics = [#tpu.dimension_semantics<parallel>], iteration_bounds = array<i64: 1>, scalar_prefetch = 0 : i64, scratch_operands = 0 : i64, tpu.core_type = #tpu.core_type<tc>, window_params = [{transform_indices = @transform_0, window_bounds = array<i64: 32, 256>}, {pipeline_mode = #tpu.pipeline_mode<synchronous>, transform_indices = @transform_1, window_bounds = array<i64: 256, 32>}, {pipeline_mode = #tpu.pipeline_mode<synchronous>, transform_indices = @transform_2, window_bounds = array<i64: 8, 256>}, {transform_indices = @transform_3, window_bounds = array<i64: 8, 256>}]} {
    %c0 = arith.constant 0 : index
    %c0_0 = arith.constant 0 : index
    %0 = vector.load %arg2[%c0, %c0_0] : memref<256x32xbf16, #tpu.memory_space<vmem>>, vector<256x32xbf16>
    %c0_1 = arith.constant 0 : index
    %c0_2 = arith.constant 0 : index
    %1 = vector.load %arg1[%c0_1, %c0_2] : memref<32x256xbf16, #tpu.memory_space<vmem>>, vector<32x256xbf16>
    %cst = arith.constant dense<0.000000e+00> : vector<256x256xf32>
    %2 = tpu.matmul %0, %1, %cst {dimension_numbers = #tpu.dot_dimension_numbers<[1], [0], [0], [1], [0, 0, 1, 1], [], []>} : vector<256x32xbf16>, vector<32x256xbf16>, vector<256x256xf32> -> vector<256x256xf32>
    %cst_3 = arith.constant 0.000000e+00 : f32
    %3 = vector.broadcast %cst_3 : f32 to vector<256x256xf32>
    %4 = arith.maximumf %2, %3 : vector<256x256xf32>
    %c0_4 = arith.constant 0 : index
    %c0_5 = arith.constant 0 : index
    %5 = vector.load %arg3[%c0_4, %c0_5] : memref<8x256xbf16, #tpu.memory_space<vmem>>, vector<8x256xbf16>
    %6 = arith.truncf %4 : vector<256x256xf32> to vector<256x256xbf16>
    %cst_6 = arith.constant dense<0.000000e+00> : vector<8x256xf32>
    %7 = tpu.matmul %5, %6, %cst_6 {dimension_numbers = #tpu.dot_dimension_numbers<[1], [0], [0], [1], [0, 0, 1, 1], [], []>} : vector<8x256xbf16>, vector<256x256xbf16>, vector<8x256xf32> -> vector<8x256xf32>
    %c0_7 = arith.constant 0 : index
    %c0_8 = arith.constant 0 : index
    %8 = vector.load %arg4[%c0_7, %c0_8] : memref<8x256xf32, #tpu.memory_space<vmem>>, vector<8x256xf32>
    tpu.vector_store %arg4[%c0_7, %c0_8], %7 {strides = array<i32>} : memref<8x256xf32, #tpu.memory_space<vmem>>, vector<8x256xf32>,
    return
  }
  func.func @transform_0(%arg0: i32) -> (i32, i32) {
    %c0_i32 = arith.constant 0 : i32
    %c0_i32_0 = arith.constant 0 : i32
    return %c0_i32, %arg0 : i32, i32
  }
  func.func @transform_1(%arg0: i32) -> (i32, i32) {
    %c0_i32 = arith.constant 0 : i32
    %c0_i32_0 = arith.constant 0 : i32
    %c0_i32_1 = arith.constant 0 : i32
    return %c0_i32, %c0_i32_0 : i32, i32
  }
  func.func @transform_2(%arg0: i32) -> (i32, i32) {
    %c0_i32 = arith.constant 0 : i32
    %c0_i32_0 = arith.constant 0 : i32
    %c0_i32_1 = arith.constant 0 : i32
    return %c0_i32, %c0_i32_0 : i32, i32
  }
  func.func @transform_3(%arg0: i32) -> (i32, i32) {
    %c0_i32 = arith.constant 0 : i32
    %c0_i32_0 = arith.constant 0 : i32
    return %c0_i32, %arg0 : i32, i32
  }
}

</mosaic_0001>

<bundles_post_ra>
// kernel: tpu_custom_call.1
= control target key start
LH: loop header
LB: loop body
LE: loop exit
PB: predicated region body
PF: predicated region fallthrough
CT: control target
= control target key end

     0   :  { %v641_v2 = vmov 0   ;;  %vm152_vm0 = vcmask 261120   ;;  %s823_s0 = inlined_call_operand.vmem [shape: bf16[32,256], index: 0, kind: input, shape index: {}]   ;;  %s824_s1 = inlined_call_operand.vmem [shape: bf16[256,32], index: 1, kind: input, shape index: {}]   ;;  %s825_s2 = inlined_call_operand.vmem [shape: bf16[8,256], index: 2, kind: input, shape index: {}]   ;;  %s826_s3 = inlined_call_operand.hbm [shape: f32[8,256], index: 3, kind: output, shape index: {}]  }
   0x1   :  { %v595_v0 = vld [vmem:[%s823_s0 + $0x14] ss:$8 sps:$4 sm:$0xff]   ;;  %v597_v1 = vld [vmem:[%s823_s0 + $0x10] ss:$8 sps:$4 sm:$0xff]   ;;  %233 = vmatprep.mubr.bf16.mxu0 %v641_v2  ;;  %v598_v3 = vld [vmem:[%s823_s0 + $0x4] ss:$8 sps:$4 sm:$0xff]  }
   0x2   :  { %213 = vmatprep.subr.bf16.mxu0 %v595_v0  ;;  %v600_v4 = vld [vmem:[%s823_s0] ss:$8 sps:$4 sm:$0xff]  }
   0x3   :  { %214 = vmatpush1.bf16.msra.mxu0 %v597_v1  ;;  %v601_v5 = vld [vmem:[%s824_s1] sm:$0xff]   ;;  %v602_v6 = vld [vmem:[%s824_s1 + $0x8] sm:$0xff]  }
   0x4   :  { %215 = vmatprep.subr.bf16.mxu0 %v598_v3 }
   0x7   :  { %216 = vmatpush1.bf16.msra.mxu0 %v600_v4 }
   0xa   :  { %575 = vmatmul.mubr.msk.bf16.vlgmr.msra.gmra.mxu0 %vm152_vm0, %v601_v5 }
   0xb   :  { %243 = vmatprep.mubr.bf16.mxu0 %v641_v2 }
  0x12   :  { %576 = vmatmul.mubr.msk.bf16.gmra.mxu0 %vm152_vm0, %v602_v6 }
  0x13   :  { %8 = vsyncpa [#allocation3], 0  ;;  %253 = vmatprep.mubr.bf16.mxu0 %v641_v2  ;;  %v603_v7 = vld [vmem:[%s824_s1 + $0x10] sm:$0xff]   ;;  %v604_v8 = vld [vmem:[%s824_s1 + $0x18] sm:$0xff]  }
  0x14   :  { %v605_v9 = vld [vmem:[%s824_s1 + $0x20] sm:$0xff]   ;;  %v606_v10 = vld [vmem:[%s824_s1 + $0x28] sm:$0xff]   ;;  %v607_v11 = vld [vmem:[%s824_s1 + $0x30] sm:$0xff]  }
  0x15   :  { %v608_v12 = vld [vmem:[%s824_s1 + $0x38] sm:$0xff]   ;;  %v609_v13 = vld [vmem:[%s824_s1 + $0x40] sm:$0xff]   ;;  %v610_v14 = vld [vmem:[%s824_s1 + $0x48] sm:$0xff]  }
  0x16   :  { %v611_v15 = vld [vmem:[%s824_s1 + $0x50] sm:$0xff]   ;;  %v612_v16 = vld [vmem:[%s824_s1 + $0x58] sm:$0xff]   ;;  %v613_v17 = vld [vmem:[%s824_s1 + $0x60] sm:$0xff]  }
  0x17   :  { %v614_v18 = vld [vmem:[%s824_s1 + $0x68] sm:$0xff]   ;;  %v615_v19 = vld [vmem:[%s824_s1 + $0x70] sm:$0xff]   ;;  %v616_v20 = vld [vmem:[%s824_s1 + $0x78] sm:$0xff]  }
  0x18   :  { %v766_v49 = vld [vmem:[%s825_s2] sm:$0xff]  ;;  %s642_s2 = smov [#allocation2]  }
  0x19   :  { %v592_v51 = vcombine.high %v766_v49, %v766_v49  ;;  %s547_s0 = sshll.u32 %s642_s2, 4  ;;  %s548_s0 = int_to_ptr.vmem [resolvable:$true] %s547_s0 }
  0x1a   :  { %577 = vmatmul.mubr.msk.bf16.gmra.mxu0 %vm152_vm0, %v603_v7  ;;  %s619_s25 = scalar_lea.vmem %s548_s0, 256  ;;  %p624_p1 = scmp.lt.s32.totalorder %s548_s0, %s548_s0 }
  0x1b   :  { %263 = vmatprep.mubr.bf16.mxu0 %v641_v2  ;;  %530 = vmatprep.mubr.bf16.mxu1 %v592_v51  ;;  %p620_p0 = scmp.ne.s32.totalorder %s548_s0, %s619_s25  ;;  %p625_p2 = scmp.lt.s32.totalorder %s619_s25, %s619_s25 }
  0x1d   :  { %p626_p3 = por %p625_p2, %p624_p1 }
  0x1f   :  { %p627_p4 = pnand %p626_p3, %p620_p0 }
  0x22   :  { %578 = vmatmul.mubr.msk.bf16.gmra.mxu0 %vm152_vm0, %v604_v8 }
  0x23   :  { %273 = vmatprep.mubr.bf16.mxu0 %v641_v2 }
  0x2a   :  { %579 = vmatmul.mubr.msk.bf16.gmra.mxu0 %vm152_vm0, %v605_v9 }
  0x2b   :  { %283 = vmatprep.mubr.bf16.mxu0 %v641_v2 }
  0x32   :  { %580 = vmatmul.mubr.msk.bf16.gmra.mxu0 %vm152_vm0, %v606_v10 }
  0x33   :  { %293 = vmatprep.mubr.bf16.mxu0 %v641_v2 }
  0x3a   :  { %581 = vmatmul.mubr.msk.bf16.gmra.mxu0 %vm152_vm0, %v607_v11 }
  0x3b   :  { %303 = vmatprep.mubr.bf16.mxu0 %v641_v2 }
  0x42   :  { %582 = vmatmul.mubr.msk.bf16.gmra.mxu0 %vm152_vm0, %v608_v12 }
  0x43   :  { %313 = vmatprep.mubr.bf16.mxu0 %v641_v2 }
  0x4a   :  { %583 = vmatmul.mubr.msk.bf16.gmra.mxu0 %vm152_vm0, %v609_v13 }
  0x4b   :  { %323 = vmatprep.mubr.bf16.mxu0 %v641_v2 }
  0x52   :  { %584 = vmatmul.mubr.msk.bf16.gmra.mxu0 %vm152_vm0, %v610_v14 }
  0x53   :  { %333 = vmatprep.mubr.bf16.mxu0 %v641_v2 }
  0x5a   :  { %585 = vmatmul.mubr.msk.bf16.gmra.mxu0 %vm152_vm0, %v611_v15 }
  0x5b   :  { %343 = vmatprep.mubr.bf16.mxu0 %v641_v2 }
  0x62   :  { %586 = vmatmul.mubr.msk.bf16.gmra.mxu0 %vm152_vm0, %v612_v16 }
  0x63   :  { %353 = vmatprep.mubr.bf16.mxu0 %v641_v2 }
  0x6a   :  { %587 = vmatmul.mubr.msk.bf16.gmra.mxu0 %vm152_vm0, %v613_v17 }
  0x6b   :  { %363 = vmatprep.mubr.bf16.mxu0 %v641_v2 }
  0x72   :  { %588 = vmatmul.mubr.msk.bf16.gmra.mxu0 %vm152_vm0, %v614_v18 }
  0x73   :  { %373 = vmatprep.mubr.bf16.mxu0 %v641_v2 }
  0x7a   :  { %589 = vmatmul.mubr.msk.bf16.gmra.mxu0 %vm152_vm0, %v615_v19 }
  0x7b   :  { %383 = vmatprep.mubr.bf16.mxu0 %v641_v2 }
  0x82   :  { %590 = vmatmul.mubr.msk.bf16.gmra.mxu0 %vm152_vm0, %v616_v20 }
  0xca   :  { %v235_v21 = vpop.f32.mrf.mxu0 }
  0xcb   :  { %v394_v24 = vmax.f32 %v235_v21, 0.0 }
  0xcc   :  { %v237_v22 = vpop.f32.mrf.mxu0 }
  0xcd   :  { %v395_v27 = vmax.f32 %v237_v22, 0.0 }
  0xce   :  { %v239_v23 = vpop.f32.mrf.mxu0 }
  0xcf   :  { %v396_v25 = vmax.f32 %v239_v23, 0.0 }
  0xd0   :  { %v241_v26 = vpop.f32.mrf.mxu0 }
  0xd1   :  { %v739_v28 = vpack.c.bf16 %v396_v25, %v394_v24  ;;  %v397_v29 = vmax.f32 %v241_v26, 0.0 }
  0xd2   :  { %v245_v30 = vpop.f32.mrf.mxu0 }
  0xd3   :  { %v741_v31 = vpack.c.bf16 %v397_v29, %v395_v27  ;;  %v398_v34 = vmax.f32 %v245_v30, 0.0 }
  0xd4   :  { %v247_v32 = vpop.f32.mrf.mxu0 }
  0xd5   :  { %v399_v37 = vmax.f32 %v247_v32, 0.0 }
  0xd6   :  { %v249_v33 = vpop.f32.mrf.mxu0 }
  0xd7   :  { %v400_v35 = vmax.f32 %v249_v33, 0.0 }
  0xd8   :  { %v251_v36 = vpop.f32.mrf.mxu0 }
  0xd9   :  { %v743_v38 = vpack.c.bf16 %v400_v35, %v398_v34  ;;  %v401_v39 = vmax.f32 %v251_v36, 0.0 }
  0xda   :  { %v745_v40 = vpop.f32.mrf.mxu0 }
  0xdb   :  { %v747_v41 = vpack.c.bf16 %v401_v39, %v399_v37 }
  0xdc   :  { %v749_v42 = vpop.f32.mrf.mxu0 }
  0xde   :  { %v751_v43 = vpop.f32.mrf.mxu0 }
  0xe0   :  { %v753_v44 = vpop.f32.mrf.mxu0 }
  0xe2   :  { %v755_v45 = vpop.f32.mrf.mxu0 }
  0xe4   :  { %v757_v46 = vpop.f32.mrf.mxu0 }
  0xe6   :  { %v759_v47 = vpop.f32.mrf.mxu0 }
  0xe8   :  { %v761_v48 = vpop.f32.mrf.mxu0 }
  0xe9   :  { %v409_v39 = vmax.f32 %v761_v48, 0.0 }
  0xea   :  { %v768_v50 = vpop.f32.mrf.mxu0 }
  0xec   :  { %v277_v52 = vpop.f32.mrf.mxu0 }
  0xed   :  { %v411_v33 = vmax.f32 %v277_v52, 0.0  ;;  %v405_v52 = vmax.f32 %v753_v44, 0.0  ;;  %v404_v44 = vmax.f32 %v751_v43, 0.0 }
  0xee   :  { %v772_v53 = vpop.f32.mrf.mxu0 }
  0xef   :  { %v412_v35 = vmax.f32 %v772_v53, 0.0 }
  0xf0   :  { %v281_v54 = vpop.f32.mrf.mxu0 }
  0xf1   :  { %v413_v21 = vmax.f32 %v281_v54, 0.0  ;;  %v410_v54 = vmax.f32 %v768_v50, 0.0  ;;  %v406_v50 = vmax.f32 %v755_v45, 0.0 }
  0xf2   :  { %v285_v55 = vpop.f32.mrf.mxu0 }
  0xf3   :  { %v414_v30 = vmax.f32 %v285_v55, 0.0  ;;  %v468_v51 = vpack.c.bf16 %v413_v21, %v411_v33 }
  0xf4   :  { %v287_v56 = vpop.f32.mrf.mxu0 }
  0xf5   :  { %v415_v18 = vmax.f32 %v287_v56, 0.0 }
  0xf6   :  { %v289_v57 = vpop.f32.mrf.mxu0 }
  0xf7   :  { %v416_v22 = vmax.f32 %v289_v57, 0.0  ;;  %v407_v57 = vmax.f32 %v757_v46, 0.0  ;;  %v403_v46 = vmax.f32 %v749_v42, 0.0 }
  0xf8   :  { %v291_v58 = vpop.f32.mrf.mxu0 }
  0xf9   :  { %v417_v14 = vmax.f32 %v291_v58, 0.0  ;;  %v469_v36 = vpack.c.bf16 %v416_v22, %v414_v30 }
  0xfa   :  { %v295_v59 = vpop.f32.mrf.mxu0 }
  0xfb   :  { %v418_v16 = vmax.f32 %v295_v59, 0.0  ;;  %v470_v25 = vpack.c.bf16 %v417_v14, %v415_v18  ;;  %v408_v59 = vmax.f32 %v759_v47, 0.0 }
  0xfc   :  { %v297_v60 = vpop.f32.mrf.mxu0 }
  0xfd   :  { %v419_v9 = vmax.f32 %v297_v60, 0.0  ;;  %v467_v60 = vpack.c.bf16 %v412_v35, %v410_v54  ;;  %v465_v47 = vpack.c.bf16 %v408_v59, %v406_v50 }
  0xfe   :  { %v299_v61 = vpop.f32.mrf.mxu0 }
  0xff   :  { %v420_v11 = vmax.f32 %v299_v61, 0.0  ;;  %v466_v61 = vpack.c.bf16 %v409_v39, %v407_v57 }
 0x100   :  { %v301_v62 = vpop.f32.mrf.mxu0 }
 0x101   :  { %v421_v4 = vmax.f32 %v301_v62, 0.0  ;;  %v471_v23 = vpack.c.bf16 %v420_v11, %v418_v16 }
 0x102   :  { %v305_v63 = vpop.f32.mrf.mxu0 }
 0x103   :  { %v422_v7 = vmax.f32 %v305_v63, 0.0  ;;  %v472_v15 = vpack.c.bf16 %v421_v4, %v419_v9  ;;  %v402_v4 = vmax.f32 %v745_v40, 0.0 }
 0x104   :  { %v307_v0 = vpop.f32.mrf.mxu0 }
 0x105   :  { %v423_v5 = vmax.f32 %v307_v0, 0.0  ;;  %v463_v45 = vpack.c.bf16 %v404_v44, %v402_v4 }
 0x106   :  { %v309_v1 = vpop.f32.mrf.mxu0 }
 0x107   :  { %v424_v2 = vmax.f32 %v309_v1, 0.0 }
 0x108   :  { %v311_v3 = vpop.f32.mrf.mxu0 }
 0x109   :  { %v425_v6 = vmax.f32 %v311_v3, 0.0  ;;  %v473_v13 = vpack.c.bf16 %v424_v2, %v422_v7  ;;  %v464_v3 = vpack.c.bf16 %v405_v52, %v403_v46 }
 0x10a   :  { %v315_v8 = vpop.f32.mrf.mxu0 }
 0x10b   :  { %v474_v10 = vpack.c.bf16 %v425_v6, %v423_v5  ;;  %v426_v19 = vmax.f32 %v315_v8, 0.0 }
 0x10c   :  { %v317_v12 = vpop.f32.mrf.mxu0 }
 0x10d   :  { %498 = vmatprep.subr.bf16.mxu1 %v474_v10  ;;  %v427_v26 = vmax.f32 %v317_v12, 0.0 }
 0x10e   :  { %v319_v17 = vpop.f32.mrf.mxu0  ;;  %499 = vmatpush1.bf16.msra.mxu1 %v473_v13 }
 0x10f   :  { %v428_v20 = vmax.f32 %v319_v17, 0.0  ;;  %500 = vmatprep.subr.bf16.mxu1 %v472_v15 }
 0x110   :  { %v321_v24 = vpop.f32.mrf.mxu0 }
 0x111   :  { %v774_v27 = vpack.c.bf16 %v428_v20, %v426_v19  ;;  %v429_v29 = vmax.f32 %v321_v24, 0.0 }
 0x112   :  { %v325_v32 = vpop.f32.mrf.mxu0  ;;  %501 = vmatpush1.bf16.msra.mxu1 %v471_v23 }
 0x113   :  { %v776_v34 = vpack.c.bf16 %v429_v29, %v427_v26  ;;  %502 = vmatprep.subr.bf16.mxu1 %v470_v25  ;;  %v430_v55 = vmax.f32 %v325_v32, 0.0 }
 0x114   :  { %v327_v37 = vpop.f32.mrf.mxu0 }
 0x115   :  { %v431_v62 = vmax.f32 %v327_v37, 0.0 }
 0x116   :  { %v329_v56 = vpop.f32.mrf.mxu0  ;;  %503 = vmatpush1.bf16.msra.mxu1 %v469_v36 }
 0x117   :  { %v432_v58 = vmax.f32 %v329_v56, 0.0  ;;  %504 = vmatprep.subr.bf16.mxu1 %v468_v51 }
 0x118   :  { %v331_v53 = vpop.f32.mrf.mxu0 }
 0x119   :  { %v784_v63 = vpack.c.bf16 %v432_v58, %v430_v55  ;;  %v433_v48 = vmax.f32 %v331_v53, 0.0 }
 0x11a   :  { %v787_v0 = vpop.f32.mrf.mxu0  ;;  %505 = vmatpush1.bf16.msra.mxu1 %v467_v60 }
 0x11b   :  { %v790_v1 = vpack.c.bf16 %v433_v48, %v431_v62  ;;  %506 = vmatprep.subr.bf16.mxu1 %v466_v61 }
 0x11c   :  { %v793_v2 = vpop.f32.mrf.mxu0 }
 0x11d   :  { %v435_v44 = vmax.f32 %v793_v2, 0.0  ;;  %v591_v2 = vcombine.low %v766_v49, %v766_v49 }
 0x11e   :  { %v796_v5 = vpop.f32.mrf.mxu0  ;;  %507 = vmatpush1.bf16.msra.mxu1 %v465_v47 }
 0x11f   :  { %508 = vmatprep.subr.bf16.mxu1 %v464_v3  ;;  %v436_v47 = vmax.f32 %v796_v5, 0.0 }
 0x120   :  { %v798_v6 = vpop.f32.mrf.mxu0 }
 0x121   :  { %v437_v48 = vmax.f32 %v798_v6, 0.0 }
 0x122   :  { %v800_v7 = vpop.f32.mrf.mxu0  ;;  %509 = vmatpush1.bf16.msra.mxu1 %v463_v45  ;;  %v434_v45 = vmax.f32 %v787_v0, 0.0 }
 0x123   :  { %510 = vmatprep.subr.bf16.mxu1 %v747_v41  ;;  %v438_v46 = vmax.f32 %v800_v7, 0.0  ;;  %v480_v4 = vpack.c.bf16 %v437_v48, %v435_v44 }
 0x124   :  { %v347_v42 = vpop.f32.mrf.mxu0 }
 0x125   :  { %v439_v53 = vmax.f32 %v347_v42, 0.0  ;;  %v479_v42 = vpack.c.bf16 %v436_v47, %v434_v45 }
 0x126   :  { %v803_v43 = vpop.f32.mrf.mxu0  ;;  %511 = vmatpush1.bf16.msra.mxu1 %v743_v38 }
 0x127   :  { %512 = vmatprep.subr.bf16.mxu1 %v741_v31  ;;  %v440_v61 = vmax.f32 %v803_v43, 0.0 }
 0x128   :  { %v351_v40 = vpop.f32.mrf.mxu0 }
 0x129   :  { %v441_v52 = vmax.f32 %v351_v40, 0.0  ;;  %v481_v3 = vpack.c.bf16 %v440_v61, %v438_v46 }
 0x12a   :  { %v355_v8 = vpop.f32.mrf.mxu0  ;;  %513 = vmatpush1.bf16.msra.mxu1 %v739_v28 }
 0x12b   :  { %v442_v60 = vmax.f32 %v355_v8, 0.0  ;;  %v482_v50 = vpack.c.bf16 %v441_v52, %v439_v53 }
 0x12c   :  { %v357_v9 = vpop.f32.mrf.mxu0 }
 0x12d   :  { %v443_v57 = vmax.f32 %v357_v9, 0.0 }
 0x12e   :  { %v359_v10 = vpop.f32.mrf.mxu0 }
 0x12f   :  { %v444_v55 = vmax.f32 %v359_v10, 0.0 }
 0x130   :  { %v361_v11 = vpop.f32.mrf.mxu0 }
 0x131   :  { %v445_v51 = vmax.f32 %v361_v11, 0.0  ;;  %v483_v62 = vpack.c.bf16 %v444_v55, %v442_v60 }
 0x132   :  { %v365_v12 = vpop.f32.mrf.mxu0 }
 0x133   :  { %v446_v56 = vmax.f32 %v365_v12, 0.0  ;;  %v484_v59 = vpack.c.bf16 %v445_v51, %v443_v57 }
 0x134   :  { %v367_v13 = vpop.f32.mrf.mxu0 }
 0x135   :  { %v447_v36 = vmax.f32 %v367_v13, 0.0 }
 0x136   :  { %v369_v14 = vpop.f32.mrf.mxu0 }
 0x137   :  { %v448_v37 = vmax.f32 %v369_v14, 0.0 }
 0x138   :  { %v371_v15 = vpop.f32.mrf.mxu0 }
 0x139   :  { %v449_v32 = vmax.f32 %v371_v15, 0.0  ;;  %v485_v58 = vpack.c.bf16 %v448_v37, %v446_v56 }
 0x13a   :  { %v375_v16 = vpop.f32.mrf.mxu0 }
 0x13b   :  { %v450_v35 = vmax.f32 %v375_v16, 0.0  ;;  %v486_v54 = vpack.c.bf16 %v449_v32, %v447_v36 }
 0x13c   :  { %v377_v41 = vpop.f32.mrf.mxu0 }
 0x13d   :  { %v451_v25 = vmax.f32 %v377_v41, 0.0 }
 0x13e   :  { %v379_v17 = vpop.f32.mrf.mxu0 }
 0x13f   :  { %v452_v29 = vmax.f32 %v379_v17, 0.0 }
 0x140   :  { %v381_v18 = vpop.f32.mrf.mxu0 }
 0x141   :  { %v453_v22 = vmax.f32 %v381_v18, 0.0  ;;  %v487_v39 = vpack.c.bf16 %v452_v29, %v450_v35 }
 0x142   :  { %v385_v19 = vpop.f32.mrf.mxu0 }
 0x143   :  { %v454_v28 = vmax.f32 %v385_v19, 0.0  ;;  %v488_v33 = vpack.c.bf16 %v453_v22, %v451_v25 }
 0x144   :  { %v387_v20 = vpop.f32.mrf.mxu0 }
 0x145   :  { %v455_v23 = vmax.f32 %v387_v20, 0.0 }
 0x146   :  { %v389_v38 = vpop.f32.mrf.mxu0 }
 0x147   :  { %v456_v21 = vmax.f32 %v389_v38, 0.0 }
 0x148   :  { %v391_v31 = vpop.f32.mrf.mxu0 }
 0x149   :  { %v457_v24 = vmax.f32 %v391_v31, 0.0  ;;  %v489_v30 = vpack.c.bf16 %v456_v21, %v454_v28 }
 0x14b   :  { %v490_v26 = vpack.c.bf16 %v457_v24, %v455_v23 }
 0x14d   :  { %514 = vmatprep.subr.bf16.mxu1 %v490_v26 }
 0x14e   :  { %515 = vmatpush2.bf16.msra.mxu1 %v489_v30 }
 0x14f   :  { %516 = vmatprep.subr.bf16.mxu1 %v488_v33 }
 0x152   :  { %517 = vmatpush2.bf16.msra.mxu1 %v487_v39 }
 0x153   :  { %518 = vmatprep.subr.bf16.mxu1 %v486_v54 }
 0x156   :  { %519 = vmatpush2.bf16.msra.mxu1 %v485_v58 }
 0x157   :  { %520 = vmatprep.subr.bf16.mxu1 %v484_v59 }
 0x15a   :  { %521 = vmatpush2.bf16.msra.mxu1 %v483_v62 }
 0x15b   :  { %522 = vmatprep.subr.bf16.mxu1 %v482_v50 }
 0x15e   :  { %523 = vmatpush2.bf16.msra.mxu1 %v481_v3 }
 0x15f   :  { %524 = vmatprep.subr.bf16.mxu1 %v480_v4 }
 0x162   :  { %525 = vmatpush2.bf16.msra.mxu1 %v479_v42 }
 0x163   :  { %526 = vmatprep.subr.bf16.mxu1 %v790_v1 }
 0x166   :  { %527 = vmatpush2.bf16.msra.mxu1 %v784_v63 }
 0x167   :  { %528 = vmatprep.subr.bf16.mxu1 %v776_v34 }
 0x16a   :  { %529 = vmatpush2.bf16.msra.mxu1 %v774_v27 }
 0x16d   :  { %531 = vmatmul.mubr.bf16.vlgmr.msra.gmra.mxu1 %v591_v2 }
 0x22d   :  { %v532_v5 = vpop.f32.mrf.mxu1 }
 0x22e   :  { %539 = vst [vmem:[#allocation2] sm:$0xff] %v532_v5 }
 0x22f   :  { %v534_v0 = vpop.f32.mrf.mxu1 }
 0x230   :  { %540 = vst [vmem:[#allocation2 + $0x8] sm:$0xff] %v534_v0 }
 0x231   :  { %v536_v6 = vpop.f32.mrf.mxu1 }
 0x232   :  { %630 = shalt.err (!%p627_p4)
}
 0x233   :  { %550 = dma.vmem_to_hbm [thread:$0]  %s548_s0, 256, %s826_s3, [#allocation3]   ;;  %v537_v49 = vpop.f32.mrf.mxu1 }
 0x234   :  { %639 = dma.done.wait [#allocation3], 256  }
 0x235   :  { %640 = vsyncadd [#allocation3], 4294967040 }
 0x236   :  { %554 = vsyncpa [#allocation3], 1 }

</bundles_post_ra>
